<compile_context>
chip_gen: v7x
topology: tpu7x:2x2x1
jax: 0.10.0
libtpu: 0.0.40
codegen_flags: <defaults>
</compile_context>

<pallas_src>
import functools

import jax
import jax.numpy as jnp
from jax.experimental import pallas as pl
from jax.experimental.pallas import tpu as pltpu


def _complex_drop_path_kernel(xr_ref, xi_ref, sr_ref, si_ref, or_ref, oi_ref):
    # Per-sample scale (tm, 1) broadcasts across the feature (lane) dim.
    or_ref[...] = xr_ref[...] * sr_ref[...]
    oi_ref[...] = xi_ref[...] * si_ref[...]


def _pick_tiles(rows, cols, budget_bytes=16 * 1024 * 1024):
    """Pick (tm, tn) lane-dense, VMEM-budgeted tiles for the [B, F] slabs.

    Used with a cdiv grid, so tm/tn need not divide rows/cols: tm is either
    full-extent or a multiple of 8 and tn is either full-extent or a multiple
    of 128 (keeps stores unmasked).  Budget counts the 2 input + 2 output f32
    slabs, double-buffered.
    """
    # ---- column tile: full extent when not lane-aligned, otherwise a
    # 128-multiple divisor targeting >= 2 column blocks for overlap/megacore.
    if cols % 128 == 0:
        tn = cols
        for cand in (2048, 1024, 512, 256, 128):
            if cols % cand == 0 and cols // cand >= 2:
                tn = cand
                break
    else:
        tn = cols
    n_col_blocks = -(-cols // tn)

    # ---- row tile: largest multiple of 8 under the budget (cdiv grid).
    per_row_bytes = 4 * 2 * tn * 4          # 4 slabs x double-buffer x f32
    cap = max(8, (budget_bytes // per_row_bytes) // 8 * 8)
    if rows <= cap:
        tm = rows                            # full-extent row block, in budget
        # Large slab but only one column block: split rows so there are >= 2
        # grid steps (DMA/compute overlap + both v7x TCs).
        if n_col_blocks == 1 and rows >= 16 and rows * cols >= (1 << 20):
            tm = max(8, ((rows // 2) // 8) * 8)
    else:
        tm = cap                             # multiple of 8; ragged tail masked
    return tm, tn


@functools.partial(jax.jit, static_argnames=("keep_prob",))
def _complex_drop_path_impl(x, key, keep_prob):
    B = x.shape[0]
    F = 1
    for d in x.shape[1:]:
        F *= d

    # Independent per-sample keep masks for real and imag (two separate
    # drop_path() calls in the PyTorch forward).
    kr, ki = jax.random.split(key)
    scale_r = (jax.random.bernoulli(kr, keep_prob, (B,)).astype(jnp.float32)
               / keep_prob).reshape(B, 1)
    scale_i = (jax.random.bernoulli(ki, keep_prob, (B,)).astype(jnp.float32)
               / keep_prob).reshape(B, 1)

    xr = jnp.real(x).astype(jnp.float32).reshape(B, F)
    xi = jnp.imag(x).astype(jnp.float32).reshape(B, F)

    tm, tn = _pick_tiles(B, F)
    grid = (pl.cdiv(B, tm), pl.cdiv(F, tn))

    x_spec = pl.BlockSpec((tm, tn), lambda i, j: (i, j))
    s_spec = pl.BlockSpec((tm, 1), lambda i, j: (i, 0))
    o_spec = pl.BlockSpec((tm, tn), lambda i, j: (i, j))

    real_out, imag_out = pl.pallas_call(
        _complex_drop_path_kernel,
        out_shape=(
            jax.ShapeDtypeStruct((B, F), jnp.float32),
            jax.ShapeDtypeStruct((B, F), jnp.float32),
        ),
        grid=grid,
        in_specs=[x_spec, x_spec, s_spec, s_spec],
        out_specs=(o_spec, o_spec),
        input_output_aliases={0: 0, 1: 1},     # reuse xr/xi buffers for outputs
        cost_estimate=pl.CostEstimate(
            flops=2 * B * F,
            transcendentals=0,
            bytes_accessed=4 * B * F * 4 + 4 * B * 4,
        ),
        compiler_params=pltpu.CompilerParams(
            dimension_semantics=("parallel", "parallel"),
            vmem_limit_bytes=32 * 1024 * 1024,
        ),
    )(xr, xi, scale_r, scale_i)

    # Single pack into complex64 (fused by XLA under jit).
    out = jax.lax.complex(real_out, imag_out)
    return out.reshape(x.shape)


def complex_drop_path(x, drop_prob, key, training=True):
    """x: complex64 [B, ...]; returns complex64 of the same shape."""
    drop_prob = float(drop_prob)               # must be a concrete Python float
    if drop_prob == 0.0 or not training:
        # nn.Identity / eval-mode DropPath: exact passthrough, no kernel.
        return x
    return _complex_drop_path_impl(x, key, 1.0 - drop_prob)


if __name__ == "__main__":
    # Small deterministic setup: x is complex64 [batch=2, channels=4, 16, 16].
    B, C, H, W = 2, 4, 16, 16
    drop_prob = 0.25
    keep_prob = 1.0 - drop_prob

    key = jax.random.PRNGKey(0)
    k_data_r, k_data_i, k_mask = jax.random.split(key, 3)

    xr = jax.random.normal(k_data_r, (B, C, H, W), jnp.float32)
    xi = jax.random.normal(k_data_i, (B, C, H, W), jnp.float32)
    x = jax.lax.complex(xr, xi)                       # complex64

    # Training-mode DropPath through the Pallas kernel.
    out = complex_drop_path(x, drop_prob, k_mask, training=True)
    out = jax.block_until_ready(out)

    # Pure-JAX reference with the same mask draws (same key-split order).
    kr, ki = jax.random.split(k_mask)
    sr = (jax.random.bernoulli(kr, keep_prob, (B,)).astype(jnp.float32)
          / keep_prob).reshape(B, 1, 1, 1)
    si = (jax.random.bernoulli(ki, keep_prob, (B,)).astype(jnp.float32)
          / keep_prob).reshape(B, 1, 1, 1)
    ref = jax.lax.complex(xr * sr, xi * si)

    assert out.shape == x.shape
    assert out.dtype == jnp.complex64
    assert jnp.allclose(jnp.real(out), jnp.real(ref), atol=1e-6)
    assert jnp.allclose(jnp.imag(out), jnp.imag(ref), atol=1e-6)

    # Identity paths (drop_prob == 0, or eval mode) must be exact passthrough.
    out_id = complex_drop_path(x, 0.0, k_mask, training=True)
    out_ev = complex_drop_path(x, drop_prob, k_mask, training=False)
    assert jnp.array_equal(out_id, x)
    assert jnp.array_equal(out_ev, x)

    print("KERNEL_OK")
</pallas_src>

<mosaic_0001>
module attributes {stable_mosaic.version = 11 : i64} {
  func.func @_complex_drop_path_kernel(%arg0: i32, %arg1: i32, %arg2: memref<2x512xf32, #tpu.memory_space<vmem>>, %arg3: memref<2x512xf32, #tpu.memory_space<vmem>>, %arg4: memref<2x1xf32, #tpu.memory_space<vmem>>, %arg5: memref<2x1xf32, #tpu.memory_space<vmem>>, %arg6: memref<2x512xf32, #tpu.memory_space<vmem>>, %arg7: memref<2x512xf32, #tpu.memory_space<vmem>>) attributes {dimension_semantics = [#tpu.dimension_semantics<parallel>, #tpu.dimension_semantics<parallel>], iteration_bounds = array<i64: 1, 2>, scalar_prefetch = 0 : i64, scratch_operands = 0 : i64, tpu.core_type = #tpu.core_type<tc>, window_params = [{transform_indices = @transform_0, window_bounds = array<i64: 2, 512>}, {transform_indices = @transform_1, window_bounds = array<i64: 2, 512>}, {transform_indices = @transform_2, window_bounds = array<i64: 2, 1>}, {transform_indices = @transform_3, window_bounds = array<i64: 2, 1>}, {transform_indices = @transform_4, window_bounds = array<i64: 2, 512>}, {transform_indices = @transform_5, window_bounds = array<i64: 2, 512>}]} {
    %c0 = arith.constant 0 : index
    %c0_0 = arith.constant 0 : index
    %0 = vector.load %arg2[%c0, %c0_0] : memref<2x512xf32, #tpu.memory_space<vmem>>, vector<2x512xf32>
    %c0_1 = arith.constant 0 : index
    %c0_2 = arith.constant 0 : index
    %1 = vector.load %arg4[%c0_1, %c0_2] : memref<2x1xf32, #tpu.memory_space<vmem>>, vector<2x1xf32>
    %2 = vector.broadcast %1 : vector<2x1xf32> to vector<2x512xf32>
    %3 = arith.mulf %0, %2 : vector<2x512xf32>
    %c0_3 = arith.constant 0 : index
    %c0_4 = arith.constant 0 : index
    %4 = vector.load %arg6[%c0_3, %c0_4] : memref<2x512xf32, #tpu.memory_space<vmem>>, vector<2x512xf32>
    tpu.vector_store %arg6[%c0_3, %c0_4], %3 {strides = array<i32>} : memref<2x512xf32, #tpu.memory_space<vmem>>, vector<2x512xf32>,
    %c0_5 = arith.constant 0 : index
    %c0_6 = arith.constant 0 : index
    %5 = vector.load %arg3[%c0_5, %c0_6] : memref<2x512xf32, #tpu.memory_space<vmem>>, vector<2x512xf32>
    %c0_7 = arith.constant 0 : index
    %c0_8 = arith.constant 0 : index
    %6 = vector.load %arg5[%c0_7, %c0_8] : memref<2x1xf32, #tpu.memory_space<vmem>>, vector<2x1xf32>
    %7 = vector.broadcast %6 : vector<2x1xf32> to vector<2x512xf32>
    %8 = arith.mulf %5, %7 : vector<2x512xf32>
    %c0_9 = arith.constant 0 : index
    %c0_10 = arith.constant 0 : index
    %9 = vector.load %arg7[%c0_9, %c0_10] : memref<2x512xf32, #tpu.memory_space<vmem>>, vector<2x512xf32>
    tpu.vector_store %arg7[%c0_9, %c0_10], %8 {strides = array<i32>} : memref<2x512xf32, #tpu.memory_space<vmem>>, vector<2x512xf32>,
    return
  }
  func.func @transform_0(%arg0: i32, %arg1: i32) -> (i32, i32) {
    %c0_i32 = arith.constant 0 : i32
    return %arg0, %arg1 : i32, i32
  }
  func.func @transform_1(%arg0: i32, %arg1: i32) -> (i32, i32) {
    %c0_i32 = arith.constant 0 : i32
    return %arg0, %arg1 : i32, i32
  }
  func.func @transform_2(%arg0: i32, %arg1: i32) -> (i32, i32) {
    %c0_i32 = arith.constant 0 : i32
    %c0_i32_0 = arith.constant 0 : i32
    return %arg0, %c0_i32 : i32, i32
  }
  func.func @transform_3(%arg0: i32, %arg1: i32) -> (i32, i32) {
    %c0_i32 = arith.constant 0 : i32
    %c0_i32_0 = arith.constant 0 : i32
    return %arg0, %c0_i32 : i32, i32
  }
  func.func @transform_4(%arg0: i32, %arg1: i32) -> (i32, i32) {
    %c0_i32 = arith.constant 0 : i32
    return %arg0, %arg1 : i32, i32
  }
  func.func @transform_5(%arg0: i32, %arg1: i32) -> (i32, i32) {
    %c0_i32 = arith.constant 0 : i32
    return %arg0, %arg1 : i32, i32
  }
}

</mosaic_0001>

<bundles_post_ra>
// kernel: custom-call.1
= control target key start
LH: loop header
LB: loop body
LE: loop exit
PB: predicated region body
PF: predicated region fallthrough
CT: control target
= control target key end

     0   :  { %s59_s0 = inlined_call_operand.hbm [shape: c64[2,4,16,16], index: 0, kind: input, shape index: {}]   ;;  %s60_s1 = inlined_call_operand.vmem [shape: f32[2,4,16,16], index: 1, kind: output, shape index: {}]  }
   0x1   :  { %s2_s8 = scalar_lea.hbm %s59_s0, 2048 }
   0x2   :  { %3 = vsyncpa [#allocation0], 0  ;;  %s4_s11 = sshll.u32 %s60_s1, 4  ;;  %s34_s14 = scalar_lea.hbm %s59_s0, 4096  ;;  %s5_s11 = int_to_ptr.vmem [resolvable:$true] %s4_s11 }
   0x3   :  { %p11_p0 = scmp.ne.s32.totalorder %s2_s8, %s34_s14  ;;  %p13_p1 = scmp.lt.u32.totalorder %s2_s8, %s59_s0 }
   0x4   :  { %p14_p2 = scmp.lt.u32.totalorder %s34_s14, %s34_s14  ;;  %p16_p4 = scmp.lt.u32.totalorder %s34_s14, %s2_s8 }
   0x6   :  { %p15_p3 = por %p14_p2, %p13_p1 }
   0x8   :  { %p17_p5 = por %p16_p4, %p15_p3 }
   0xa   :  { %p18_p6 = pnand %p17_p5, %p11_p0 }
   0xc   :  { %21 = shalt.err (!%p18_p6)  }
   0xd   :  { %s22_s17 = scalar_lea.vmem %s5_s11, 2048  ;;  %p27_p8 = scmp.lt.s32.totalorder %s5_s11, %s5_s11 }
   0xe   :  { %p23_p7 = scmp.ne.s32.totalorder %s5_s11, %s22_s17  ;;  %p28_p9 = scmp.lt.s32.totalorder %s22_s17, %s22_s17 }
  0x10   :  { %p29_p10 = por %p28_p9, %p27_p8 }
  0x12   :  { %p30_p11 = pnand %p29_p10, %p23_p7 }
  0x14   :  { %33 = shalt.err (!%p30_p11)  }
  0x15   :  { %7 = dma.hbm_to_vmem [thread:$0]  %s2_s8, 2048, %s5_s11, [#allocation0] }
  0x16   :  { %35 = dma.done.wait [#allocation0], 2048  }
  0x17   :  { %36 = vsyncadd [#allocation0], 4294965248 }
  0x18   :  { %9 = vsyncpa [#allocation0], 1 }

// kernel: custom-call
= control target key start
LH: loop header
LB: loop body
LE: loop exit
PB: predicated region body
PF: predicated region fallthrough
CT: control target
= control target key end

     0   :  { %2 = vsyncpa [#allocation0], 0  ;;  %s61_s0 = inlined_call_operand.hbm [shape: c64[2,4,16,16], index: 0, kind: input, shape index: {}]   ;;  %s62_s1 = inlined_call_operand.vmem [shape: f32[2,4,16,16], index: 1, kind: output, shape index: {}]  }
   0x1   :  { %s3_s8 = sshll.u32 %s62_s1, 4  ;;  %s9_s11 = scalar_lea.hbm %s61_s0, 2048  ;;  %s4_s8 = int_to_ptr.vmem [resolvable:$true] %s3_s8 }
   0x2   :  { %p10_p0 = scmp.ne.s32.totalorder %s61_s0, %s9_s11  ;;  %s11_s16 = scalar_lea.hbm %s61_s0, 4096 }
   0x3   :  { %p12_p1 = scmp.lt.u32.totalorder %s11_s16, %s9_s11  ;;  %p13_p2 = scmp.lt.u32.totalorder %s9_s11, %s61_s0 }
   0x5   :  { %p14_p3 = por %p13_p2, %p12_p1 }
   0x7   :  { %p15_p4 = pnand %p14_p3, %p10_p0 }
   0x9   :  { %18 = shalt.err (!%p15_p4)  }
   0xa   :  { %s19_s1 = scalar_lea.vmem %s4_s8, 2048  ;;  %p24_p6 = scmp.lt.s32.totalorder %s4_s8, %s4_s8 }
   0xb   :  { %p20_p5 = scmp.ne.s32.totalorder %s4_s8, %s19_s1  ;;  %p25_p7 = scmp.lt.s32.totalorder %s19_s1, %s19_s1 }
   0xd   :  { %p26_p8 = por %p25_p7, %p24_p6 }
   0xf   :  { %p27_p9 = pnand %p26_p8, %p20_p5 }
  0x11   :  { %30 = shalt.err (!%p27_p9)  }
  0x12   :  { %6 = dma.hbm_to_vmem [thread:$0]  %s61_s0, 2048, %s4_s8, [#allocation0] }
  0x13   :  { %31 = dma.done.wait [#allocation0], 2048  }
  0x14   :  { %32 = vsyncadd [#allocation0], 4294965248 }
  0x15   :  { %8 = vsyncpa [#allocation0], 1 }

// kernel: custom-call.2
= control target key start
LH: loop header
LB: loop body
LE: loop exit
PB: predicated region body
PF: predicated region fallthrough
CT: control target
= control target key end

     0   :  { %s126_s0 = inlined_call_operand.vmem [shape: f32[2,4,16,16], index: 0, kind: input, shape index: {}]   ;;  %s127_s1 = inlined_call_operand.vmem [shape: f32[2,4,16,16], index: 1, kind: input, shape index: {}]   ;;  %s128_s2 = inlined_call_operand.hbm [shape: c64[2,4,16,16], index: 2, kind: output, shape index: {}]  }
   0x1   :  { %s87_s11 = scalar_lea.hbm %s128_s2, 2048 }
   0x2   :  { %4 = vsyncpa [#allocation0], 0  ;;  %s5_s14 = sshll.u32 %s126_s0, 4  ;;  %s6_s14 = int_to_ptr.vmem [resolvable:$true] %s5_s14 }
   0x3   :  { %s18_s15 = scalar_lea.vmem %s6_s14, 2048  ;;  %p23_p1 = scmp.lt.s32.totalorder %s6_s14, %s6_s14 }
   0x4   :  { %p19_p0 = scmp.ne.s32.totalorder %s6_s14, %s18_s15  ;;  %p24_p2 = scmp.lt.s32.totalorder %s18_s15, %s18_s15 }
   0x6   :  { %p25_p3 = por %p24_p2, %p23_p1 }
   0x8   :  { %p26_p4 = pnand %p25_p3, %p19_p0 }
   0xa   :  { %29 = shalt.err (!%p26_p4)  }
   0xb   :  { %p31_p5 = scmp.ne.s32.totalorder %s128_s2, %s87_s11  ;;  %s32_s0 = scalar_lea.hbm %s128_s2, 4096 }
   0xc   :  { %p33_p6 = scmp.lt.u32.totalorder %s32_s0, %s87_s11  ;;  %p34_p7 = scmp.lt.u32.totalorder %s87_s11, %s128_s2 }
   0xe   :  { %p35_p8 = por %p34_p7, %p33_p6 }
  0x10   :  { %p36_p9 = pnand %p35_p8, %p31_p5 }
  0x12   :  { %39 = shalt.err (!%p36_p9)  }
  0x13   :  { %8 = dma.vmem_to_hbm [thread:$0]  %s6_s14, 2048, %s128_s2, [#allocation0] }
  0x14   :  { %65 = dma.done.wait [#allocation0], 2048  }
  0x15   :  { %66 = vsyncadd [#allocation0], 4294965248 }
  0x16   :  { %10 = vsyncpa [#allocation0], 1 }
  0x17   :  { %11 = vsyncpa [#allocation1], 0  ;;  %s12_s28 = sshll.u32 %s127_s1, 4  ;;  %s13_s28 = int_to_ptr.vmem [resolvable:$true] %s12_s28 }
  0x18   :  { %s40_s29 = scalar_lea.vmem %s13_s28, 2048  ;;  %p45_p11 = scmp.lt.s32.totalorder %s13_s28, %s13_s28 }
  0x19   :  { %p41_p10 = scmp.ne.s32.totalorder %s13_s28, %s40_s29  ;;  %p46_p12 = scmp.lt.s32.totalorder %s40_s29, %s40_s29 }
  0x1b   :  { %p47_p13 = por %p46_p12, %p45_p11 }
  0x1d   :  { %p48_p0 = pnand %p47_p13, %p41_p10 }
  0x1f   :  { %51 = shalt.err (!%p48_p0)  }
  0x20   :  { %p53_p1 = scmp.ne.s32.totalorder %s87_s11, %s32_s0  ;;  %p56_p2 = scmp.lt.u32.totalorder %s32_s0, %s32_s0 }
  0x22   :  { %p57_p3 = por %p56_p2, %p34_p7 }
  0x24   :  { %p59_p4 = por %p57_p3, %p33_p6 }
  0x26   :  { %p60_p5 = pnand %p59_p4, %p53_p1 }
  0x28   :  { %63 = shalt.err (!%p60_p5)  }
  0x29   :  { %15 = dma.vmem_to_hbm [thread:$0]  %s13_s28, 2048, %s87_s11, [#allocation1] }
  0x2a   :  { %67 = dma.done.wait [#allocation1], 2048  }
  0x2b   :  { %68 = vsyncadd [#allocation1], 4294965248 }
  0x2c   :  { %17 = vsyncpa [#allocation1], 1 }

// kernel: _complex_drop_path_impl.15
= control target key start
LH: loop header
LB: loop body
LE: loop exit
PB: predicated region body
PF: predicated region fallthrough
CT: control target
= control target key end

     0   :  { %s675_s18 = smov 0   ;;  %s677_s19 = smov 0   ;;  %s720_s0 = inlined_call_operand.vmem [shape: f32[2,1024], index: 0, kind: input, shape index: {}, may-alias: {0,4}]   ;;  %s721_s1 = inlined_call_operand.vmem [shape: f32[2,1024], index: 1, kind: input, shape index: {}, may-alias: {1,5}]   ;;  %s722_s2 = inlined_call_operand.vmem [shape: f32[2,1], index: 2, kind: input, shape index: {}]   ;;  %s723_s3 = inlined_call_operand.vmem [shape: f32[2,1], index: 3, kind: input, shape index: {}]   ;;  %s724_s4 = inlined_call_operand.vmem [shape: f32[2,1024], index: 4, kind: output, shape index: {0}, may-alias: {0,4}]   ;;  %s725_s5 = inlined_call_operand.vmem [shape: f32[2,1024], index: 5, kind: output, shape index: {1}, may-alias: {1,5}]  }
   0x1   :  { %s679_s20 = smov 0  }
   0x2 LB: > { %s25_s21 = sadd.s32 1, %s637_s19  ;;  %p581_p0 = scmp.ge.s32.totalorder %s641_s20, 1  ;;  %s641_s20 = sphi %s679_s20, %s16_s20   ;;  %s637_s19 = sphi %s677_s19, %s727_s19   ;;  %s633_s18 = sphi %s675_s18, %s726_s18  }
   0x3   : > { %p26_p1 = scmp.ge.s32.totalorder %s25_s21, 2  ;;  %p248_p2 = scmp.lt.s32.totalorder %s641_s20, 3 }
   0x5   : > { %s729_s21 = smov (%p26_p1, %s25_s21), 0  ;;  %p249_p3 = pnand %p581_p0, %p248_p2 }
   0x6   : > { %v359_v0 = vld [vmem:[%s722_s2] sm:$0x3] (!%p249_p3)  ;;  %v643_v1 = vmov (!%p249_p3), 0   ;;  %s582_s26 = sshll.u32 (!%p249_p3), %s633_s18, 2  ;;  %v644_v3 = vmov (!%p249_p3), 269488144   ;;  %v367_v5 = vlaneseq (!%p249_p3) }
   0x7   : > { %252 = sbr.rel (%p249_p3) target bundleno = 145 (0x91), region = 36  ;;  %618 = vset.pattern.permute.xlu0 (!%p249_p3), %v643_v1  ;;  %v375_v2 = vld [vmem:[%s723_s3] sm:$0x3] (!%p249_p3)  ;;  %p313_p4 = scmp.lt.s32.totalorder (!%p249_p3), %s582_s26, 7  ;;  %v365_v4 = vunpack.c.l.s4 (!%p249_p3), %v644_v3 }
   0x8   : > { %362 = vperm.xlu0 (!%p249_p3), %618, %v359_v0   ;;  %v368_v7 = vshrl.u32 (!%p249_p3), %v367_v5, 7 }
   0x9   : > { %v366_v6 = vunpack.c.0.s8 (!%p249_p3), %v365_v4 }
   0xb   : > { %v369_v8 = vsub.s32 (!%p249_p3), %v366_v6, %v368_v7 }
   0xc   : > { %378 = vperm.xlu0 (!%p249_p3), %618, %v375_v2  }
   0xe   : > { %s731_s26 = smov (!%p313_p4, %s582_s26), 7 }
   0xf   : > { %s583_s27 = sshll.u32 %s731_s26, 1 }
  0x10   : > { %s318_s30 = scalar_lea.vmem %s720_s0, %s583_s27  ;;  %s328_s8 = scalar_lea.vmem %s721_s1, %s583_s27 }
  0x11   : > { %v358_v10 = vld [vmem:[%s318_s30] sm:$0xff]  ;;  %s346_s11 = scalar_lea.vmem %s724_s4, %s583_s27  ;;  %s356_s14 = scalar_lea.vmem %s725_s5, %s583_s27 }
  0x12   : > { %v374_v14 = vld [vmem:[%s328_s8] sm:$0xff] }
  0x87   : > { %v363_v9 = vpop.permute.xlu0 %362 }
  0x88   : > { %v370_v11 = vrot.slane %v363_v9, %v369_v8 }
  0x8a   : > { %v372_v12 = vmul.f32 %v370_v11, %v358_v10 }
  0x8b   : > { %v379_v13 = vpop.permute.xlu0 %378 }
  0x8c   : > { %373 = vst [vmem:[%s346_s11] sm:$0xff] %v372_v12  ;;  %v386_v15 = vrot.slane %v379_v13, %v369_v8 }
  0x8e   : > { %v388_v16 = vmul.f32 %v386_v15, %v374_v14 }
  0x90   : > { %389 = vst [vmem:[%s356_s14] sm:$0xff] %v388_v16 }
  0x91 PF: > { %s16_s20 = sadd.s32 1, %s641_s20   ;;  %s726_s18 = smov %s637_s19 }
  0x92   : > { %p13_p5 = scmp.ge.s32.totalorder %s16_s20, 4   ;;  %s727_s19 = smov %s729_s21 }
  0x94   :  { %15 = sbr.rel (!%p13_p5) target bundleno = 2 (0x2), region = 87 }

</bundles_post_ra>
